<compile_context>
chip_gen: v7x
topology: tpu7x:2x2x1
jax: 0.10.0
libtpu: 0.0.40
codegen_flags: <defaults>
</compile_context>

<pallas_src>
import functools

import jax
import jax.numpy as jnp
from jax.experimental import pallas as pl
from jax.experimental.pallas import tpu as pltpu

EPS = 1e-8


def _round_up(x: int, m: int) -> int:
    return ((x + m - 1) // m) * m


def _neg_sdr_kernel(est_ref, gt_ref, out_ref,
                    se_ref, sg_ref, seg_ref, se2_ref, sg2_ref,
                    *, sdr_type: str, true_t: int, tile_t: int):
    k = pl.program_id(1)

    @pl.when(k == 0)
    def _init():
        zero = jnp.zeros_like(se_ref)
        se_ref[...] = zero
        sg_ref[...] = zero
        seg_ref[...] = zero
        se2_ref[...] = zero
        sg2_ref[...] = zero

    est = est_ref[...].astype(jnp.float32)
    gt = gt_ref[...].astype(jnp.float32)

    # Mask out-of-range lanes of the (possibly partial) last time tile.
    if true_t % tile_t != 0:
        lane = jax.lax.broadcasted_iota(jnp.int32, est.shape, 1)
        valid = (k * tile_t + lane) < true_t
        est = jnp.where(valid, est, 0.0)
        gt = jnp.where(valid, gt, 0.0)

    # Streaming per-row moments (lane reductions -> (TILE_N, 1)).
    se_ref[...] += jnp.sum(est, axis=1, keepdims=True)
    sg_ref[...] += jnp.sum(gt, axis=1, keepdims=True)
    seg_ref[...] += jnp.sum(est * gt, axis=1, keepdims=True)
    se2_ref[...] += jnp.sum(est * est, axis=1, keepdims=True)
    sg2_ref[...] += jnp.sum(gt * gt, axis=1, keepdims=True)

    @pl.when(k == pl.num_programs(1) - 1)
    def _finalize():
        inv_t = jnp.float32(1.0 / true_t)
        se = se_ref[...]
        sg = sg_ref[...]
        # zero_mean=True: centered moments from raw moments.
        seg_c = seg_ref[...] - se * sg * inv_t                        # Σ ê·ĝ
        se2_c = jnp.maximum(se2_ref[...] - se * se * inv_t, 0.0)      # Σ ê²
        sg2_c = jnp.maximum(sg2_ref[...] - sg * sg * inv_t, 0.0)      # Σ ĝ²

        if sdr_type in ("sisdr", "sdsdr"):
            s_energy = sg2_c + EPS
            # num = Σ scaled_target², scaled_target = (Σê·ĝ)·ĝ / s_energy
            num = seg_c * seg_c * sg2_c / (s_energy * s_energy)
        else:  # 'snr'
            num = sg2_c

        if sdr_type == "sisdr":
            # Σ (ê - scaled_target)²
            den = se2_c - 2.0 * seg_c * seg_c / s_energy + num
        else:  # 'snr', 'sdsdr': e_noise = ê - ĝ
            den = se2_c - 2.0 * seg_c + sg2_c
        den = jnp.maximum(den, 0.0) + EPS

        losses = num / den
        losses = 10.0 * jnp.log10(losses + EPS)   # take_log=True
        out_ref[...] = -losses                    # negative SDR, (TILE_N, 1)


def snr_losses(est: jax.Array, gt: jax.Array, name: str = "sisdr",
               *, tile_n: int | None = None, tile_t: int | None = None) -> jax.Array:
    """Equivalent of SNRLosses(name)(est, gt) with est, gt of shape (B, C, T).

    Returns the per-sample negative SDR vector of shape (B * C,), float32.
    """
    assert name in ("sisdr", "snr", "sdsdr"), (
        f"Invalid loss function used: Loss {name} not found")
    assert est.shape == gt.shape and est.ndim == 3
    B, C, T = est.shape
    N = B * C
    est2 = est.reshape(N, T)
    gt2 = gt.reshape(N, T)

    itemsize = jnp.dtype(est2.dtype).itemsize
    sub = 8 * max(1, 4 // itemsize)       # sublane multiple: 8 (f32), 16 (bf16), 32 (i8)

    if tile_t is None:
        if T % 128 == 0:
            tile_t = min(T, 2048)
        elif T <= 4096:
            tile_t = T                    # full-extent block is always legal
        else:
            tile_t = 2048
    else:
        assert tile_t == T or tile_t % 128 == 0, "tile_t must be T or a multiple of 128"

    if tile_n is None:
        tile_n = min(_round_up(N, sub), 256)
    else:
        assert tile_n == N or tile_n % sub == 0

    grid = (pl.cdiv(N, tile_n), pl.cdiv(T, tile_t))

    kernel = functools.partial(_neg_sdr_kernel, sdr_type=name,
                               true_t=T, tile_t=tile_t)

    # 2 inputs x 2 pipeline buffers per tile; keep headroom under v7x's 64 MiB VMEM.
    block_bytes = tile_n * tile_t * itemsize
    vmem_limit = int(min(max(8 * block_bytes, 32 * 1024 * 1024), 48 * 1024 * 1024))

    cost = pl.CostEstimate(
        flops=8 * N * T,
        transcendentals=N,
        bytes_accessed=2 * N * T * itemsize + 4 * N,
    )

    out = pl.pallas_call(
        kernel,
        out_shape=jax.ShapeDtypeStruct((N, 1), jnp.float32),
        grid_spec=pltpu.PrefetchScalarGridSpec(
            num_scalar_prefetch=0,
            grid=grid,
            in_specs=[
                pl.BlockSpec((tile_n, tile_t), lambda i, k: (i, k)),
                pl.BlockSpec((tile_n, tile_t), lambda i, k: (i, k)),
            ],
            out_specs=pl.BlockSpec((tile_n, 1), lambda i, k: (i, 0)),
            scratch_shapes=[pltpu.VMEM((tile_n, 1), jnp.float32) for _ in range(5)],
        ),
        compiler_params=pltpu.CompilerParams(
            dimension_semantics=("parallel", "arbitrary"),
            vmem_limit_bytes=vmem_limit,
        ),
        cost_estimate=cost,
    )(est2, gt2)
    return out.reshape(N)


def _ref_neg_sdr(est, gt, name):
    """Pure-JAX reference mirroring asteroid SingleSrcNegSDR (reduction='none')."""
    B, C, T = est.shape
    est = est.reshape(B * C, T).astype(jnp.float32)
    gt = gt.reshape(B * C, T).astype(jnp.float32)
    gt = gt - jnp.mean(gt, axis=1, keepdims=True)
    est = est - jnp.mean(est, axis=1, keepdims=True)
    if name in ("sisdr", "sdsdr"):
        dot = jnp.sum(est * gt, axis=1, keepdims=True)
        s_energy = jnp.sum(gt * gt, axis=1, keepdims=True) + EPS
        scaled = dot * gt / s_energy
    else:
        scaled = gt
    e_noise = est - scaled if name in ("sisdr", "snr") else est - gt
    losses = jnp.sum(scaled**2, axis=1) / (jnp.sum(e_noise**2, axis=1) + EPS)
    losses = 10.0 * jnp.log10(losses + EPS)
    return -losses


if __name__ == "__main__":
    key = jax.random.PRNGKey(0)
    B, C, T = 2, 4, 1000   # small shapes; T chosen so the tiled path has a ragged tail
    k1, k2 = jax.random.split(key)
    gt = jax.random.normal(k1, (B, C, T), dtype=jnp.float32)
    est = gt + 0.3 * jax.random.normal(k2, (B, C, T), dtype=jnp.float32)

    ok = True
    for name in ("sisdr", "snr", "sdsdr"):
        ref = _ref_neg_sdr(est, gt, name)
        # 1) default tiling (single full-T block at this small T)
        out_a = jax.block_until_ready(snr_losses(est, gt, name=name))
        # 2) forced multi-step streaming path with a masked partial tail tile
        out_b = jax.block_until_ready(snr_losses(est, gt, name=name, tile_t=256))
        for out in (out_a, out_b):
            if out.shape != (B * C,) or not bool(jnp.all(jnp.isfinite(out))):
                ok = False
            if not bool(jnp.allclose(out, ref, atol=1e-3, rtol=1e-3)):
                ok = False

    if ok:
        print("KERNEL_OK")
</pallas_src>

<mosaic_0001>
module attributes {stable_mosaic.version = 11 : i64} {
  func.func @_neg_sdr_kernel(%arg0: i32, %arg1: i32, %arg2: memref<8x1000xf32, #tpu.memory_space<vmem>>, %arg3: memref<8x1000xf32, #tpu.memory_space<vmem>>, %arg4: memref<8x1xf32, #tpu.memory_space<vmem>>, %arg5: memref<8x1xf32, #tpu.memory_space<vmem>>, %arg6: memref<8x1xf32, #tpu.memory_space<vmem>>, %arg7: memref<8x1xf32, #tpu.memory_space<vmem>>, %arg8: memref<8x1xf32, #tpu.memory_space<vmem>>, %arg9: memref<8x1xf32, #tpu.memory_space<vmem>>) attributes {dimension_semantics = [#tpu.dimension_semantics<parallel>, #tpu.dimension_semantics<arbitrary>], iteration_bounds = array<i64: 1, 1>, scalar_prefetch = 0 : i64, scratch_operands = 5 : i64, tpu.core_type = #tpu.core_type<tc>, window_params = [{transform_indices = @transform_0, window_bounds = array<i64: 8, 1000>}, {transform_indices = @transform_1, window_bounds = array<i64: 8, 1000>}, {transform_indices = @transform_2, window_bounds = array<i64: 8, 1>}]} {
    %c0_i32 = arith.constant 0 : i32
    %0 = arith.cmpi eq, %arg1, %c0_i32 : i32
    %1 = arith.extui %0 : i1 to i32
    %c0_i32_0 = arith.constant 0 : i32
    %2 = arith.cmpi ne, %1, %c0_i32_0 : i32
    scf.if %2 {
      %cst_30 = arith.constant 0.000000e+00 : f32
      %36 = vector.broadcast %cst_30 : f32 to vector<8x1xf32>
      %c0_31 = arith.constant 0 : index
      %c0_32 = arith.constant 0 : index
      %37 = vector.load %arg5[%c0_31, %c0_32] : memref<8x1xf32, #tpu.memory_space<vmem>>, vector<8x1xf32>
      tpu.vector_store %arg5[%c0_31, %c0_32], %36 {strides = array<i32>} : memref<8x1xf32, #tpu.memory_space<vmem>>, vector<8x1xf32>,
      %c0_33 = arith.constant 0 : index
      %c0_34 = arith.constant 0 : index
      %38 = vector.load %arg6[%c0_33, %c0_34] : memref<8x1xf32, #tpu.memory_space<vmem>>, vector<8x1xf32>
      tpu.vector_store %arg6[%c0_33, %c0_34], %36 {strides = array<i32>} : memref<8x1xf32, #tpu.memory_space<vmem>>, vector<8x1xf32>,
      %c0_35 = arith.constant 0 : index
      %c0_36 = arith.constant 0 : index
      %39 = vector.load %arg7[%c0_35, %c0_36] : memref<8x1xf32, #tpu.memory_space<vmem>>, vector<8x1xf32>
      tpu.vector_store %arg7[%c0_35, %c0_36], %36 {strides = array<i32>} : memref<8x1xf32, #tpu.memory_space<vmem>>, vector<8x1xf32>,
      %c0_37 = arith.constant 0 : index
      %c0_38 = arith.constant 0 : index
      %40 = vector.load %arg8[%c0_37, %c0_38] : memref<8x1xf32, #tpu.memory_space<vmem>>, vector<8x1xf32>
      tpu.vector_store %arg8[%c0_37, %c0_38], %36 {strides = array<i32>} : memref<8x1xf32, #tpu.memory_space<vmem>>, vector<8x1xf32>,
      %c0_39 = arith.constant 0 : index
      %c0_40 = arith.constant 0 : index
      %41 = vector.load %arg9[%c0_39, %c0_40] : memref<8x1xf32, #tpu.memory_space<vmem>>, vector<8x1xf32>
      tpu.vector_store %arg9[%c0_39, %c0_40], %36 {strides = array<i32>} : memref<8x1xf32, #tpu.memory_space<vmem>>, vector<8x1xf32>,
    } else {
    }
    %c0 = arith.constant 0 : index
    %c0_1 = arith.constant 0 : index
    %3 = vector.load %arg2[%c0, %c0_1] : memref<8x1000xf32, #tpu.memory_space<vmem>>, vector<8x1000xf32>
    %c0_2 = arith.constant 0 : index
    %c0_3 = arith.constant 0 : index
    %4 = vector.load %arg3[%c0_2, %c0_3] : memref<8x1000xf32, #tpu.memory_space<vmem>>, vector<8x1000xf32>
    %c0_4 = arith.constant 0 : index
    %c0_5 = arith.constant 0 : index
    %5 = vector.load %arg5[%c0_4, %c0_5] : memref<8x1xf32, #tpu.memory_space<vmem>>, vector<8x1xf32>
    %cst = arith.constant dense<0.000000e+00> : vector<8xf32>
    %6 = vector.multi_reduction <add>, %3, %cst [1] : vector<8x1000xf32> to vector<8xf32>
    %7 = vector.shape_cast %6 : vector<8xf32> to vector<8x1xf32>
    %8 = arith.addf %5, %7 : vector<8x1xf32>
    %c0_6 = arith.constant 0 : index
    %c0_7 = arith.constant 0 : index
    %9 = vector.load %arg5[%c0_6, %c0_7] : memref<8x1xf32, #tpu.memory_space<vmem>>, vector<8x1xf32>
    tpu.vector_store %arg5[%c0_6, %c0_7], %8 {strides = array<i32>} : memref<8x1xf32, #tpu.memory_space<vmem>>, vector<8x1xf32>,
    %c0_8 = arith.constant 0 : index
    %c0_9 = arith.constant 0 : index
    %10 = vector.load %arg6[%c0_8, %c0_9] : memref<8x1xf32, #tpu.memory_space<vmem>>, vector<8x1xf32>
    %cst_10 = arith.constant dense<0.000000e+00> : vector<8xf32>
    %11 = vector.multi_reduction <add>, %4, %cst_10 [1] : vector<8x1000xf32> to vector<8xf32>
    %12 = vector.shape_cast %11 : vector<8xf32> to vector<8x1xf32>
    %13 = arith.addf %10, %12 : vector<8x1xf32>
    %c0_11 = arith.constant 0 : index
    %c0_12 = arith.constant 0 : index
    %14 = vector.load %arg6[%c0_11, %c0_12] : memref<8x1xf32, #tpu.memory_space<vmem>>, vector<8x1xf32>
    tpu.vector_store %arg6[%c0_11, %c0_12], %13 {strides = array<i32>} : memref<8x1xf32, #tpu.memory_space<vmem>>, vector<8x1xf32>,
    %c0_13 = arith.constant 0 : index
    %c0_14 = arith.constant 0 : index
    %15 = vector.load %arg7[%c0_13, %c0_14] : memref<8x1xf32, #tpu.memory_space<vmem>>, vector<8x1xf32>
    %16 = arith.mulf %3, %4 : vector<8x1000xf32>
    %cst_15 = arith.constant dense<0.000000e+00> : vector<8xf32>
    %17 = vector.multi_reduction <add>, %16, %cst_15 [1] : vector<8x1000xf32> to vector<8xf32>
    %18 = vector.shape_cast %17 : vector<8xf32> to vector<8x1xf32>
    %19 = arith.addf %15, %18 : vector<8x1xf32>
    %c0_16 = arith.constant 0 : index
    %c0_17 = arith.constant 0 : index
    %20 = vector.load %arg7[%c0_16, %c0_17] : memref<8x1xf32, #tpu.memory_space<vmem>>, vector<8x1xf32>
    tpu.vector_store %arg7[%c0_16, %c0_17], %19 {strides = array<i32>} : memref<8x1xf32, #tpu.memory_space<vmem>>, vector<8x1xf32>,
    %c0_18 = arith.constant 0 : index
    %c0_19 = arith.constant 0 : index
    %21 = vector.load %arg8[%c0_18, %c0_19] : memref<8x1xf32, #tpu.memory_space<vmem>>, vector<8x1xf32>
    %22 = arith.mulf %3, %3 : vector<8x1000xf32>
    %cst_20 = arith.constant dense<0.000000e+00> : vector<8xf32>
    %23 = vector.multi_reduction <add>, %22, %cst_20 [1] : vector<8x1000xf32> to vector<8xf32>
    %24 = vector.shape_cast %23 : vector<8xf32> to vector<8x1xf32>
    %25 = arith.addf %21, %24 : vector<8x1xf32>
    %c0_21 = arith.constant 0 : index
    %c0_22 = arith.constant 0 : index
    %26 = vector.load %arg8[%c0_21, %c0_22] : memref<8x1xf32, #tpu.memory_space<vmem>>, vector<8x1xf32>
    tpu.vector_store %arg8[%c0_21, %c0_22], %25 {strides = array<i32>} : memref<8x1xf32, #tpu.memory_space<vmem>>, vector<8x1xf32>,
    %c0_23 = arith.constant 0 : index
    %c0_24 = arith.constant 0 : index
    %27 = vector.load %arg9[%c0_23, %c0_24] : memref<8x1xf32, #tpu.memory_space<vmem>>, vector<8x1xf32>
    %28 = arith.mulf %4, %4 : vector<8x1000xf32>
    %cst_25 = arith.constant dense<0.000000e+00> : vector<8xf32>
    %29 = vector.multi_reduction <add>, %28, %cst_25 [1] : vector<8x1000xf32> to vector<8xf32>
    %30 = vector.shape_cast %29 : vector<8xf32> to vector<8x1xf32>
    %31 = arith.addf %27, %30 : vector<8x1xf32>
    %c0_26 = arith.constant 0 : index
    %c0_27 = arith.constant 0 : index
    %32 = vector.load %arg9[%c0_26, %c0_27] : memref<8x1xf32, #tpu.memory_space<vmem>>, vector<8x1xf32>
    tpu.vector_store %arg9[%c0_26, %c0_27], %31 {strides = array<i32>} : memref<8x1xf32, #tpu.memory_space<vmem>>, vector<8x1xf32>,
    %c0_i32_28 = arith.constant 0 : i32
    %33 = arith.cmpi eq, %arg1, %c0_i32_28 : i32
    %34 = arith.extui %33 : i1 to i32
    %c0_i32_29 = arith.constant 0 : i32
    %35 = arith.cmpi ne, %34, %c0_i32_29 : i32
    scf.if %35 {
      %c0_30 = arith.constant 0 : index
      %c0_31 = arith.constant 0 : index
      %36 = vector.load %arg5[%c0_30, %c0_31] : memref<8x1xf32, #tpu.memory_space<vmem>>, vector<8x1xf32>
      %c0_32 = arith.constant 0 : index
      %c0_33 = arith.constant 0 : index
      %37 = vector.load %arg6[%c0_32, %c0_33] : memref<8x1xf32, #tpu.memory_space<vmem>>, vector<8x1xf32>
      %c0_34 = arith.constant 0 : index
      %c0_35 = arith.constant 0 : index
      %38 = vector.load %arg7[%c0_34, %c0_35] : memref<8x1xf32, #tpu.memory_space<vmem>>, vector<8x1xf32>
      %39 = arith.mulf %36, %37 : vector<8x1xf32>
      %cst_36 = arith.constant 1.000000e-03 : f32
      %40 = vector.broadcast %cst_36 : f32 to vector<8x1xf32>
      %41 = arith.mulf %39, %40 : vector<8x1xf32>
      %42 = arith.subf %38, %41 : vector<8x1xf32>
      %c0_37 = arith.constant 0 : index
      %c0_38 = arith.constant 0 : index
      %43 = vector.load %arg8[%c0_37, %c0_38] : memref<8x1xf32, #tpu.memory_space<vmem>>, vector<8x1xf32>
      %44 = arith.mulf %36, %36 : vector<8x1xf32>
      %cst_39 = arith.constant 1.000000e-03 : f32
      %45 = vector.broadcast %cst_39 : f32 to vector<8x1xf32>
      %46 = arith.mulf %44, %45 : vector<8x1xf32>
      %47 = arith.subf %43, %46 : vector<8x1xf32>
      %cst_40 = arith.constant 0.000000e+00 : f32
      %48 = vector.broadcast %cst_40 : f32 to vector<8x1xf32>
      %49 = arith.maximumf %47, %48 : vector<8x1xf32>
      %c0_41 = arith.constant 0 : index
      %c0_42 = arith.constant 0 : index
      %50 = vector.load %arg9[%c0_41, %c0_42] : memref<8x1xf32, #tpu.memory_space<vmem>>, vector<8x1xf32>
      %51 = arith.mulf %37, %37 : vector<8x1xf32>
      %cst_43 = arith.constant 1.000000e-03 : f32
      %52 = vector.broadcast %cst_43 : f32 to vector<8x1xf32>
      %53 = arith.mulf %51, %52 : vector<8x1xf32>
      %54 = arith.subf %50, %53 : vector<8x1xf32>
      %cst_44 = arith.constant 0.000000e+00 : f32
      %55 = vector.broadcast %cst_44 : f32 to vector<8x1xf32>
      %56 = arith.maximumf %54, %55 : vector<8x1xf32>
      %cst_45 = arith.constant 9.99999993E-9 : f32
      %57 = vector.broadcast %cst_45 : f32 to vector<8x1xf32>
      %58 = arith.addf %56, %57 : vector<8x1xf32>
      %59 = arith.mulf %42, %42 : vector<8x1xf32>
      %60 = arith.mulf %59, %56 : vector<8x1xf32>
      %61 = arith.mulf %58, %58 : vector<8x1xf32>
      %62 = arith.divf %60, %61 : vector<8x1xf32>
      %cst_46 = arith.constant 2.000000e+00 : f32
      %63 = vector.broadcast %cst_46 : f32 to vector<8x1xf32>
      %64 = arith.mulf %63, %42 : vector<8x1xf32>
      %65 = arith.mulf %64, %42 : vector<8x1xf32>
      %66 = arith.divf %65, %58 : vector<8x1xf32>
      %67 = arith.subf %49, %66 : vector<8x1xf32>
      %68 = arith.addf %67, %62 : vector<8x1xf32>
      %cst_47 = arith.constant 0.000000e+00 : f32
      %69 = vector.broadcast %cst_47 : f32 to vector<8x1xf32>
      %70 = arith.maximumf %68, %69 : vector<8x1xf32>
      %cst_48 = arith.constant 9.99999993E-9 : f32
      %71 = vector.broadcast %cst_48 : f32 to vector<8x1xf32>
      %72 = arith.addf %70, %71 : vector<8x1xf32>
      %73 = arith.divf %62, %72 : vector<8x1xf32>
      %cst_49 = arith.constant 9.99999993E-9 : f32
      %74 = vector.broadcast %cst_49 : f32 to vector<8x1xf32>
      %75 = arith.addf %73, %74 : vector<8x1xf32>
      %76 = math.log %75 : vector<8x1xf32>
      %cst_50 = arith.constant 0.434294492 : f32
      %77 = vector.broadcast %cst_50 : f32 to vector<8x1xf32>
      %78 = arith.mulf %76, %77 : vector<8x1xf32>
      %cst_51 = arith.constant 1.000000e+01 : f32
      %79 = vector.broadcast %cst_51 : f32 to vector<8x1xf32>
      %80 = arith.mulf %79, %78 : vector<8x1xf32>
      %cst_52 = arith.constant 0.000000e+00 : f32
      %81 = vector.broadcast %cst_52 : f32 to vector<8x1xf32>
      %82 = arith.subf %81, %80 : vector<8x1xf32>
      %c0_53 = arith.constant 0 : index
      %c0_54 = arith.constant 0 : index
      %83 = vector.load %arg4[%c0_53, %c0_54] : memref<8x1xf32, #tpu.memory_space<vmem>>, vector<8x1xf32>
      tpu.vector_store %arg4[%c0_53, %c0_54], %82 {strides = array<i32>} : memref<8x1xf32, #tpu.memory_space<vmem>>, vector<8x1xf32>,
    } else {
    }
    return
  }
  func.func @transform_0(%arg0: i32, %arg1: i32) -> (i32, i32) {
    %c0_i32 = arith.constant 0 : i32
    return %arg0, %arg1 : i32, i32
  }
  func.func @transform_1(%arg0: i32, %arg1: i32) -> (i32, i32) {
    %c0_i32 = arith.constant 0 : i32
    return %arg0, %arg1 : i32, i32
  }
  func.func @transform_2(%arg0: i32, %arg1: i32) -> (i32, i32) {
    %c0_i32 = arith.constant 0 : i32
    %c0_i32_0 = arith.constant 0 : i32
    return %arg0, %c0_i32 : i32, i32
  }
}

</mosaic_0001>

<bundles_post_ra>
// kernel: tpu_custom_call.1
= control target key start
LH: loop header
LB: loop body
LE: loop exit
PB: predicated region body
PF: predicated region fallthrough
CT: control target
= control target key end

     0   :  { %7 = vsyncpa [#allocation8], 0  ;;  %s320_s0 = inlined_call_operand.hbm [shape: f32[8,1000], index: 0, kind: input, shape index: {}]   ;;  %s321_s1 = inlined_call_operand.hbm [shape: f32[8,1000], index: 1, kind: input, shape index: {}]   ;;  %s322_s2 = inlined_call_operand.vmem [shape: f32[8,1], index: 2, kind: output, shape index: {}]  }
   0x1   :  { %8 = vsyncpa [#allocation10], 0  ;;  %s259_s9 = smov [#allocation7]   ;;  %s260_s11 = smov [#allocation9]  }
   0x2   :  { %s15_s10 = sshll.u32 %s259_s9, 4  ;;  %s25_s12 = sshll.u32 %s260_s11, 4  ;;  %s16_s10 = int_to_ptr.vmem [resolvable:$true] %s15_s10  ;;  %s26_s12 = int_to_ptr.vmem [resolvable:$true] %s25_s12 }
   0x3   :  { %s211_s15 = scalar_lea.hbm %s320_s0, 1024 }
   0x4   :  { %p212_p0 = scmp.ne.s32.totalorder %s320_s0, %s211_s15  ;;  %p215_p1 = scmp.lt.u32.totalorder %s211_s15, %s320_s0 }
   0x6   :  { %p217_p2 = pnand %p215_p1, %p212_p0 }
   0x8   :  { %220 = shalt.err (!%p217_p2)
}
   0x9   :  { %s221_s20 = scalar_lea.vmem %s16_s10, 1024  ;;  %p226_p4 = scmp.lt.s32.totalorder %s16_s10, %s16_s10 }
   0xa   :  { %p222_p3 = scmp.ne.s32.totalorder %s16_s10, %s221_s20  ;;  %p227_p5 = scmp.lt.s32.totalorder %s221_s20, %s221_s20 }
   0xc   :  { %p228_p6 = por %p227_p5, %p226_p4 }
   0xe   :  { %p229_p7 = pnand %p228_p6, %p222_p3 }
  0x10   :  { %232 = shalt.err (!%p229_p7)
}
  0x11   :  { %18 = dma.hbm_to_vmem [thread:$0]  %s320_s0, 1024, %s16_s10, [#allocation8]  }
  0x12   :  { %s233_s25 = scalar_lea.hbm %s321_s1, 1024 }
  0x13   :  { %p234_p8 = scmp.ne.s32.totalorder %s321_s1, %s233_s25  ;;  %p237_p9 = scmp.lt.u32.totalorder %s233_s25, %s321_s1 }
  0x15   :  { %p239_p10 = pnand %p237_p9, %p234_p8 }
  0x17   :  { %242 = shalt.err (!%p239_p10)
}
  0x18   :  { %s243_s30 = scalar_lea.vmem %s26_s12, 1024  ;;  %p248_p12 = scmp.lt.s32.totalorder %s26_s12, %s26_s12 }
  0x19   :  { %p244_p11 = scmp.ne.s32.totalorder %s26_s12, %s243_s30  ;;  %p249_p13 = scmp.lt.s32.totalorder %s243_s30, %s243_s30 }
  0x1b   :  { %p250_p0 = por %p249_p13, %p248_p12 }
  0x1d   :  { %p251_p1 = pnand %p250_p0, %p244_p11 }
  0x1f   :  { %254 = shalt.err (!%p251_p1)
}
  0x20   :  { %28 = dma.hbm_to_vmem [thread:$0]  %s321_s1, 1024, %s26_s12, [#allocation10]  }
  0x21   :  { %255 = dma.done.wait [#allocation8], 1024  }
  0x22   :  { %256 = vsyncadd [#allocation8], 4294966272 }
  0x23   :  { %257 = dma.done.wait [#allocation10], 1024  }
  0x24   :  { %258 = vsyncadd [#allocation10], 4294966272  ;;  %vm39_vm0 = vcmask 7168   ;;  %v261_v0 = vmov 0.0   ;;  %v53_v1 = vld [vmem:[#allocation9] sm:$0xff]  ;;  %v54_v2 = vld [vmem:[#allocation9 + $0x8] sm:$0xff] }
  0x25   :  { %41 = vst.msk [vmem:[#allocation3] sm:$0xff] %vm39_vm0, %v261_v0  ;;  %40 = vst.msk [vmem:[#allocation2] sm:$0xff] %vm39_vm0, %v261_v0  ;;  %v55_v3 = vld [vmem:[#allocation9 + $0x10] sm:$0xff]  ;;  %v77_v4 = vadd.f32 %v54_v2, %v53_v1  ;;  %v132_v5 = vmul.f32 %v53_v1, %v53_v1  ;;  %v133_v6 = vmul.f32 %v54_v2, %v54_v2  ;;  %v56_v7 = vld [vmem:[#allocation9 + $0x18] sm:$0xff]  ;;  %vm68_vm1 = vcmask 850944  }
  0x26   :  { %42 = vst.msk [vmem:[#allocation4] sm:$0xff] %vm39_vm0, %v261_v0  ;;  %43 = vst.msk [vmem:[#allocation5] sm:$0xff] %vm39_vm0, %v261_v0  ;;  %v45_v8 = vld [vmem:[#allocation7] sm:$0xff]  ;;  %v134_v9 = vmul.f32 %v55_v3, %v55_v3  ;;  %v46_v11 = vld [vmem:[#allocation7 + $0x8] sm:$0xff]  ;;  %v135_v13 = vmul.f32 %v56_v7, %v56_v7 }
  0x27   :  { %44 = vst.msk [vmem:[#allocation6] sm:$0xff] %vm39_vm0, %v261_v0  ;;  %v78_v10 = vadd.f32 %v77_v4, %v55_v3  ;;  %v47_v12 = vld [vmem:[#allocation7 + $0x10] sm:$0xff]  ;;  %v57_v14 = vld [vmem:[#allocation9 + $0x20] sm:$0xff]  ;;  %v60_v15 = vld [vmem:[#allocation9 + $0x38] sm:$0xff]  ;;  %v62_v16 = vadd.f32 %v46_v11, %v45_v8  ;;  %v140_v17 = vadd.f32 %v133_v6, %v132_v5  ;;  %v90_v18 = vmul.f32 %v53_v1, %v45_v8 }
  0x28   :  { %v91_v19 = vmul.f32 %v54_v2, %v46_v11  ;;  %v48_v21 = vld [vmem:[#allocation7 + $0x18] sm:$0xff]  ;;  %v58_v22 = vld [vmem:[#allocation9 + $0x28] sm:$0xff]  ;;  %v136_v24 = vmul.f32 %v57_v14, %v57_v14  ;;  %v92_v26 = vmul.f32 %v55_v3, %v47_v12  ;;  %v83_v28 = vsel %vm68_vm1, %v60_v15, 0.0  ;;  %v49_v29 = vld [vmem:[#allocation7 + $0x20] sm:$0xff] }
  0x29   :  { %v79_v20 = vadd.f32 %v78_v10, %v56_v7  ;;  %v63_v23 = vadd.f32 %v62_v16, %v47_v12  ;;  %v141_v25 = vadd.f32 %v140_v17, %v134_v9  ;;  %v137_v30 = vmul.f32 %v58_v22, %v58_v22  ;;  %v59_v32 = vld [vmem:[#allocation9 + $0x30] sm:$0xff]  ;;  %v52_v33 = vld [vmem:[#allocation7 + $0x38] sm:$0xff]  ;;  %v50_v39 = vld [vmem:[#allocation7 + $0x28] sm:$0xff] }
  0x2a   :  { %v139_v31 = vmul.f32 %v60_v15, %v60_v15  ;;  %v93_v36 = vmul.f32 %v56_v7, %v48_v21  ;;  %v98_v37 = vadd.f32 %v91_v19, %v90_v18  ;;  %v138_v40 = vmul.f32 %v59_v32, %v59_v32  ;;  %v51_v48 = vld [vmem:[#allocation7 + $0x30] sm:$0xff] }
  0x2b   :  { %v80_v27 = vadd.f32 %v79_v20, %v57_v14  ;;  %v64_v34 = vadd.f32 %v63_v23, %v48_v21  ;;  %v142_v35 = vadd.f32 %v141_v25, %v135_v13  ;;  %v111_v41 = vmul.f32 %v45_v8, %v45_v8 }
  0x2c   :  { %v112_v42 = vmul.f32 %v46_v11, %v46_v11  ;;  %v94_v45 = vmul.f32 %v57_v14, %v49_v29  ;;  %v99_v46 = vadd.f32 %v98_v37, %v92_v26  ;;  %v69_v49 = vsel %vm68_vm1, %v52_v33, 0.0  ;;  %v76_v17 = vld [vmem:[#allocation3] sm:$0xff]  ;;  %v61_v20 = vld [vmem:[#allocation2] sm:$0xff] }
  0x2d   :  { %v81_v38 = vadd.f32 %v80_v27, %v58_v22  ;;  %v65_v43 = vadd.f32 %v64_v34, %v49_v29  ;;  %v143_v44 = vadd.f32 %v142_v35, %v136_v24  ;;  %v146_v50 = vsel %vm68_vm1, %v139_v31, 0.0  ;;  %v89_v26 = vld [vmem:[#allocation4] sm:$0xff] }
  0x2e   :  { %v113_v51 = vmul.f32 %v47_v12, %v47_v12  ;;  %v95_v54 = vmul.f32 %v58_v22, %v50_v39  ;;  %v100_v55 = vadd.f32 %v99_v46, %v93_v36  ;;  %v97_v57 = vmul.f32 %v60_v15, %v52_v33 }
  0x2f   :  { %v82_v47 = vadd.f32 %v81_v38, %v59_v32  ;;  %v66_v52 = vadd.f32 %v65_v43, %v50_v39  ;;  %v144_v53 = vadd.f32 %v143_v44, %v137_v30  ;;  %v114_v58 = vmul.f32 %v48_v21, %v48_v21  ;;  %v131_v21 = vld [vmem:[#allocation6] sm:$0xff]  ;;  %v110_v30 = vld [vmem:[#allocation5] sm:$0xff] }
  0x30   :  { %v119_v59 = vadd.f32 %v112_v42, %v111_v41  ;;  %v96_v62 = vmul.f32 %v59_v32, %v51_v48  ;;  %v101_v63 = vadd.f32 %v100_v55, %v94_v45  ;;  %v115_v0 = vmul.f32 %v49_v29, %v49_v29 }
  0x31   :  { %v84_v56 = vadd.f32 %v83_v28, %v82_v47  ;;  %v67_v60 = vadd.f32 %v66_v52, %v51_v48  ;;  %v145_v61 = vadd.f32 %v144_v53, %v138_v40  ;;  %v104_v5 = vsel %vm68_vm1, %v97_v57, 0.0 }
  0x32   :  { %v120_v1 = vadd.f32 %v119_v59, %v113_v51  ;;  %v102_v4 = vadd.f32 %v101_v63, %v95_v54  ;;  %v116_v6 = vmul.f32 %v50_v39, %v50_v39  ;;  %v118_v9 = vmul.f32 %v52_v33, %v52_v33 }
  0x33   :  { %85 = vadd.xlane.f32.xlu0 %v84_v56  ;;  %v70_v2 = vadd.f32 %v69_v49, %v67_v60  ;;  %v147_v3 = vadd.f32 %v146_v50, %v145_v61  ;;  %v117_v10 = vmul.f32 %v51_v48, %v51_v48 }
  0x34   :  { %v121_v7 = vadd.f32 %v120_v1, %v114_v58  ;;  %v103_v8 = vadd.f32 %v102_v4, %v96_v62  ;;  %v125_v14 = vsel %vm68_vm1, %v118_v9, 0.0 }
  0x35   :  { %71 = vadd.xlane.f32.xlu1 %v70_v2 }
  0x36   :  { %v122_v11 = vadd.f32 %v121_v7, %v115_v0  ;;  %v105_v12 = vadd.f32 %v104_v5, %v103_v8 }
  0x37   :  { %148 = vadd.xlane.f32.xlu0 %v147_v3 }
  0x38   :  { %v123_v13 = vadd.f32 %v122_v11, %v116_v6 }
  0x39   :  { %106 = vadd.xlane.f32.xlu1 %v105_v12 }
  0x3a   :  { %v124_v15 = vadd.f32 %v123_v13, %v117_v10 }
  0x3c   :  { %v126_v16 = vadd.f32 %v125_v14, %v124_v15 }
  0x3e   :  { %127 = vadd.xlane.f32.xlu0 %v126_v16 }
  0xc0   :  { %v86_v18 = vpop.xlane.xlu0 %85 }
  0xc1   :  { %v87_v19 = vadd.f32 %v86_v18, %v76_v17 }
  0xc2   :  { %v72_v22 = vpop.xlane.xlu1 %71 }
  0xc3   :  { %88 = vst.msk [vmem:[#allocation3] sm:$0xff] %vm39_vm0, %v87_v19  ;;  %v73_v23 = vadd.f32 %v72_v22, %v61_v20 }
  0xc4   :  { %v149_v24 = vpop.xlane.xlu0 %148 }
  0xc5   :  { %v150_v25 = vadd.f32 %v149_v24, %v131_v21  ;;  %75 = vst.msk [vmem:[#allocation2] sm:$0xff] %vm39_vm0, %v73_v23 }
  0xc6   :  { %v107_v27 = vpop.xlane.xlu1 %106 }
  0xc7   :  { %151 = vst.msk [vmem:[#allocation6] sm:$0xff] %vm39_vm0, %v150_v25  ;;  %v108_v28 = vadd.f32 %v107_v27, %v89_v26 }
  0xc9   :  { %109 = vst.msk [vmem:[#allocation4] sm:$0xff] %vm39_vm0, %v108_v28 }
  0xca   :  { %v156_v29 = vld [vmem:[#allocation3] sm:$0xff] }
  0xcb   :  { %v167_v31 = vmul.f32 %v156_v29, %v156_v29  ;;  %v128_v32 = vpop.xlane.xlu0 %127 }
  0xcc   :  { %v155_v34 = vld [vmem:[#allocation2] sm:$0xff]  ;;  %v129_v35 = vadd.f32 %v128_v32, %v110_v30 }
  0xcd   :  { %v168_v33 = vmul.f32 0.001, %v167_v31  ;;  %v158_v36 = vmul.f32 %v156_v29, %v155_v34  ;;  %v162_v43 = vmul.f32 %v155_v34, %v155_v34 }
  0xce   :  { %v166_v37 = vld [vmem:[#allocation6] sm:$0xff]  ;;  %130 = vst.msk [vmem:[#allocation5] sm:$0xff] %vm39_vm0, %v129_v35 }
  0xcf   :  { %v169_v38 = vsub.f32 %v166_v37, %v168_v33  ;;  %v159_v40 = vmul.f32 0.001, %v158_v36  ;;  %v163_v46 = vmul.f32 0.001, %v162_v43 }
  0xd0   :  { %v157_v42 = vld [vmem:[#allocation4] sm:$0xff] }
  0xd1   :  { %v170_v39 = vmax.f32 %v169_v38, 0.0  ;;  %v160_v45 = vsub.f32 %v157_v42, %v159_v40 }
  0xd3   :  { %v171_v41 = vadd.f32 1e-08, %v170_v39  ;;  %v177_v48 = vmul.f32 2.0, %v160_v45  ;;  %v172_v49 = vmul.f32 %v160_v45, %v160_v45 }
  0xd5   :  { %v174_v44 = vmul.f32 %v171_v41, %v171_v41  ;;  %203 = vrcp.f32 %v171_v41  ;;  %v161_v47 = vld [vmem:[#allocation5] sm:$0xff]  ;;  %v178_v51 = vmul.f32 %v177_v48, %v160_v45  ;;  %v173_v53 = vmul.f32 %v172_v49, %v170_v39 }
  0xd6   :  { %v164_v50 = vsub.f32 %v161_v47, %v163_v46 }
  0xd7   :  { %205 = vrcp.f32 %v174_v44 }
  0xd8   :  { %v165_v54 = vmax.f32 %v164_v50, 0.0 }
  0xdf   :  { %v204_v52 = vpop.eup %203 }
  0xe0   :  { %v180_v55 = vmul.f32 %v204_v52, %v178_v51 }
  0xe1   :  { %v206_v56 = vpop.eup %205 }
  0xe2   :  { %v176_v57 = vmul.f32 %v206_v56, %v173_v53  ;;  %v181_v58 = vsub.f32 %v165_v54, %v180_v55 }
  0xe4   :  { %v182_v59 = vadd.f32 %v181_v58, %v176_v57 }
  0xe6   :  { %v183_v60 = vmax.f32 %v182_v59, 0.0 }
  0xe8   :  { %v184_v61 = vadd.f32 1e-08, %v183_v60 }
  0xea   :  { %207 = vrcp.f32 %v184_v61 }
  0xf4   :  { %v208_v62 = vpop.eup %207 }
  0xf5   :  { %v186_v63 = vmul.f32 %v208_v62, %v176_v57 }
  0xf7   :  { %v187_v0 = vadd.f32 1e-08, %v186_v63 }
  0xf9   :  { %209 = vlog2.f32 %v187_v0 }
 0x103   :  { %v210_v1 = vpop.eup %209 }
 0x104   :  { %v189_v2 = vmul.f32 0.6931472, %v210_v1 }
 0x106   :  { %v190_v3 = vmul.f32 0.4342945, %v189_v2 }
 0x108   :  { %v191_v4 = vmul.f32 10.0, %v190_v3 }
 0x10a   :  { %v192_v5 = vsub.f32 0.0, %v191_v4 }
 0x10c   :  { %193 = vst.msk [vmem:[%s322_s2] sm:$0xff] %vm39_vm0, %v192_v5 }
 0x10d   :  { %198 = vsyncpa [#allocation8], 1 }
 0x10e   :  { %199 = vsyncpa [#allocation10], 1 }

</bundles_post_ra>
